<compile_context>
chip_gen: v5e
topology: v5e:2x2
jax: 0.10.0
libtpu: 0.0.40
codegen_flags: <defaults>
</compile_context>

<pallas_src>
import functools
import math

import jax
import jax.numpy as jnp
from jax.experimental import pallas as pl
from jax.experimental.pallas import tpu as pltpu


_NEG_INF = -1e30
_EXTRACTER_KEYS = ("embed", "conv_w", "conv_b", "fc1_w", "fc1_b", "fc2_w", "fc2_b")


def _round_up(n, m):
    return ((n + m - 1) // m) * m


# --------------------------- fused Pallas kernel -----------------------------

def _extracter_block(tokp_ref, len_ref, embed_ref, convw_ref, convb_ref,
                     f1w_ref, f1b_ref, f2w_ref, f2b_ref, *, K):
    """Embedding (2-D one-hot MXU matmul over the padded token rows; the -1 pad
    sentinel gives an all-zero one-hot == zero embedding == conv zero padding)
    -> Conv1d as ONE matmul vs. the tap-stacked [E, K*C] weight + K shifted
    slice-adds -> ReLU -> length-masked max-pool -> Linear+ReLU -> Linear.
    Value-only: no VMEM scratch, no store->load chains."""
    B = len_ref.shape[0]
    BLp = tokp_ref.shape[0]              # B * (L + 2*pad)
    Lp = BLp // B
    Vp, E = embed_ref.shape
    C = convb_ref.shape[1]
    KC = convw_ref.shape[1]              # K * C
    L_out = Lp - K + 1

    # ---- embedding lookup: one-hot(tokens) @ table on the MXU (bf16 x bf16 -> f32)
    tok = tokp_ref[...]                                          # [B*Lp, 1] int32
    vid = jax.lax.broadcasted_iota(jnp.int32, (BLp, Vp), 1)
    onehot = (tok == vid).astype(jnp.bfloat16)                   # [B*Lp, Vp]
    emb = jnp.dot(onehot, embed_ref[...],
                  preferred_element_type=jnp.float32)            # [B*Lp, E]  f32

    # ---- Conv1d: one MXU matmul over all K taps, then K shifted slice-adds
    y = jnp.dot(emb.astype(jnp.bfloat16), convw_ref[...],
                preferred_element_type=jnp.float32)              # [B*Lp, K*C]
    y3 = y.reshape(B, Lp, KC)
    conv = y3[:, 0:L_out, 0:C]
    for k in range(1, K):                                        # K static -> unrolled
        conv = conv + y3[:, k:k + L_out, k * C:(k + 1) * C]
    s = jnp.maximum(conv + convb_ref[...], 0.0)                  # [B, L_out, C]  f32 VPU

    # ---- length-masked max-pool (additive 0 / -1e30 mask, kept in f32)
    # TODO(synk): a real_len of 0 leaves pooled ~= -1e30 (no valid position); the
    # unreferenced TextExtracter's behaviour for empty sequences is unknown.
    pos = jax.lax.broadcasted_iota(jnp.int32, (B, L_out), 1)
    neg = jnp.where(pos < len_ref[...], 0.0, _NEG_INF)           # [B, L_out]
    pooled = jnp.max(s + neg[:, :, None], axis=1)                # [B, C]

    # ---- fc1 (ReLU) -> fc2   (bf16 weights, f32 accumulate, f32 bias / ReLU)
    h = jnp.maximum(
        jnp.dot(pooled.astype(jnp.bfloat16), f1w_ref[...],
                preferred_element_type=jnp.float32) + f1b_ref[...], 0.0)
    return jnp.dot(h.astype(jnp.bfloat16), f2w_ref[...],
                   preferred_element_type=jnp.float32) + f2b_ref[...]


def _sou1m_fused_kernel(
        q_tok_ref, u_tok_ref, q_len_ref, u_len_ref,
        q_embed_ref, q_convw_ref, q_convb_ref, q_f1w_ref, q_f1b_ref, q_f2w_ref, q_f2b_ref,
        u_embed_ref, u_convw_ref, u_convb_ref, u_f1w_ref, u_f1b_ref, u_f2w_ref, u_f2b_ref,
        m_w1_ref, m_b1_ref, m_w2_ref, m_b2_ref,
        rep_ref, rs_ref, *, K):
    O = rep_ref.shape[1] // 2

    q_rep = _extracter_block(q_tok_ref, q_len_ref, q_embed_ref, q_convw_ref,
                             q_convb_ref, q_f1w_ref, q_f1b_ref, q_f2w_ref,
                             q_f2b_ref, K=K)
    u_rep = _extracter_block(u_tok_ref, u_len_ref, u_embed_ref, u_convw_ref,
                             u_convb_ref, u_f1w_ref, u_f1b_ref, u_f2w_ref,
                             u_f2b_ref, K=K)

    # qu_represent emitted straight from the kernel (no XLA-side slices / concat).
    rep_ref[:, 0:O] = q_rep
    rep_ref[:, O:2 * O] = u_rep

    # MFC1 head on the concatenated representation: linear1 -> linear2.
    # TODO(synk): nn.Dropout is identity at inference; training-mode dropout not modeled.
    rep = rep_ref[...]                                           # [B, 2*O] f32
    h = (jnp.dot(rep.astype(jnp.bfloat16), m_w1_ref[...],
                 preferred_element_type=jnp.float32) + m_b1_ref[...])
    rs_ref[...] = (jnp.dot(h.astype(jnp.bfloat16), m_w2_ref[...],
                           preferred_element_type=jnp.float32) + m_b2_ref[...])


# ------------------------------ wrapper ---------------------------------------

def sou1m_forward(q_tokens, u_tokens, q_real_len, u_real_len, p, packed):
    B, Lq = q_tokens.shape
    _, Lu = u_tokens.shape
    K = p["extracter_kernel_size"]
    pad = p["extracter_padding"]
    C = p["extracter_kernel_num"]
    H = p["extracter_n_hidden"]
    O = p["extracter_out_dim"]
    H1 = p["MFC1_hidden"]
    O1 = p["MFC1_out"]
    Vp, E = packed["QE"]["embed"].shape

    # Pad token rows with an out-of-vocab sentinel (-1): its one-hot row is all-zero,
    # i.e. a zero embedding, which is exactly Conv1d's zero padding.  Flatten to
    # [B*Lp, 1] so the kernel needs no layout-changing reshape of the token tensor.
    def _prep_tok(t, L):
        tp = jnp.pad(t.astype(jnp.int32), ((0, 0), (pad, pad)), constant_values=-1)
        return tp.reshape(B * (L + 2 * pad), 1)

    q_tok_p = _prep_tok(q_tokens, Lq)
    u_tok_p = _prep_tok(u_tokens, Lu)
    q_len = q_real_len.reshape(B, 1).astype(jnp.int32)
    u_len = u_real_len.reshape(B, 1).astype(jnp.int32)

    args = (q_tok_p, u_tok_p, q_len, u_len,
            *[packed["QE"][k] for k in _EXTRACTER_KEYS],
            *[packed["AE"][k] for k in _EXTRACTER_KEYS],
            packed["MFC1"]["w1"], packed["MFC1"]["b1"],
            packed["MFC1"]["w2"], packed["MFC1"]["b2"])

    out_shape = (jax.ShapeDtypeStruct((B, 2 * O), jnp.float32),   # qu_represent
                 jax.ShapeDtypeStruct((B, O1), jnp.float32))      # RS

    # Advisory cost estimate (kernel is launch/DMA bound; keep XLA from serializing).
    def _nb(x):
        return math.prod(x.shape) * jnp.dtype(x.dtype).itemsize
    flops = 0
    for L in (Lq, Lu):
        Lp = L + 2 * pad
        flops += 2 * B * Lp * (Vp * E + E * K * C) + 2 * B * (C * H + H * O)
    flops += 2 * B * (2 * O * H1 + H1 * O1)
    bytes_accessed = sum(_nb(a) for a in args) + sum(_nb(s) for s in out_shape)

    vmem = pl.BlockSpec(memory_space=pltpu.MemorySpace.VMEM)
    kern = functools.partial(_sou1m_fused_kernel, K=K)

    qu_represent, rs = pl.pallas_call(
        kern,
        out_shape=out_shape,
        in_specs=[vmem] * len(args),
        out_specs=(vmem, vmem),
        cost_estimate=pl.CostEstimate(flops=flops, transcendentals=0,
                                      bytes_accessed=bytes_accessed),
    )(*args)
    return qu_represent, rs


# --------------------- deterministic params + kernel layout -------------------

def _init_extracter_params(key, p):
    V = p["extracter_vocab_size"]
    E = p["extracter_embed_dim"]
    C = p["extracter_kernel_num"]
    K = p["extracter_kernel_size"]
    H = p["extracter_n_hidden"]
    O = p["extracter_out_dim"]
    ks = jax.random.split(key, 7)
    scale = 0.1
    return {
        "embed":  scale * jax.random.normal(ks[0], (V, E), jnp.float32),
        # conv_w[k] corresponds to torch Conv1d.weight[:, :, k].T   (layout [K, E, C])
        "conv_w": scale * jax.random.normal(ks[1], (K, E, C), jnp.float32),
        "conv_b": scale * jax.random.normal(ks[2], (1, C), jnp.float32),
        "fc1_w":  scale * jax.random.normal(ks[3], (C, H), jnp.float32),
        "fc1_b":  scale * jax.random.normal(ks[4], (1, H), jnp.float32),
        "fc2_w":  scale * jax.random.normal(ks[5], (H, O), jnp.float32),
        "fc2_b":  scale * jax.random.normal(ks[6], (1, O), jnp.float32),
    }


def init_params(key, p):
    k_q, k_a, k_m = jax.random.split(key, 3)
    O = p["extracter_out_dim"]
    H1 = p["MFC1_hidden"]
    O1 = p["MFC1_out"]
    km = jax.random.split(k_m, 4)
    scale = 0.1
    return {
        "QE": _init_extracter_params(k_q, p),
        "AE": _init_extracter_params(k_a, p),
        "MFC1": {
            "w1": scale * jax.random.normal(km[0], (2 * O, H1), jnp.float32),
            "b1": scale * jax.random.normal(km[1], (1, H1), jnp.float32),
            "w2": scale * jax.random.normal(km[2], (H1, O1), jnp.float32),
            "b2": scale * jax.random.normal(km[3], (1, O1), jnp.float32),
        },
    }


def _pack_extracter(e):
    V, E = e["embed"].shape
    K, _, C = e["conv_w"].shape
    Vp = _round_up(V, 8)                          # sublane pad only; NO 128-lane padding
    return {
        "embed":  jnp.pad(e["embed"], ((0, Vp - V), (0, 0))).astype(jnp.bfloat16),
        # Tap-stacked conv weight: [E, K*C]; column k*C + c == torch weight[c, :, k].
        "conv_w": jnp.transpose(e["conv_w"], (1, 0, 2)).reshape(E, K * C).astype(jnp.bfloat16),
        "conv_b": e["conv_b"],                    # biases / VPU-side math stay f32
        "fc1_w":  e["fc1_w"].astype(jnp.bfloat16),
        "fc1_b":  e["fc1_b"],
        "fc2_w":  e["fc2_w"].astype(jnp.bfloat16),
        "fc2_b":  e["fc2_b"],
    }


def pack_params(params, p):
    """One-time layout prep: bf16 weights (f32 biases), vocab sublane-padded to a
    multiple of 8, conv taps stacked along output channels.  All refs are full-array
    VMEM blocks, so no 128 padding is needed (it would only inflate DMA bytes)."""
    del p  # shapes are taken from the arrays themselves
    m = params["MFC1"]
    return {
        "QE": _pack_extracter(params["QE"]),
        "AE": _pack_extracter(params["AE"]),
        "MFC1": {
            "w1": m["w1"].astype(jnp.bfloat16),
            "b1": m["b1"],
            "w2": m["w2"].astype(jnp.bfloat16),
            "b2": m["b2"],
        },
    }


# ----------------------------------- main --------------------------------------

if __name__ == "__main__":
    param = {
        "MFC1_hidden": 32,
        "MFC1_out": 2,
        "extracter_out_dim": 16,
        "extracter_kernel_num": 8,
        "extracter_kernel_size": 3,
        "extracter_vocab_size": 50,
        "extracter_embed_dim": 16,
        "extracter_padding": 1,
        "extracter_n_hidden": 32,
        "dropout": 0.5,
    }

    B, Lq, Lu = 2, 8, 12
    root = jax.random.PRNGKey(0)
    k_params, k_q, k_u = jax.random.split(root, 3)

    params = init_params(k_params, param)
    packed = pack_params(params, param)          # one-time bf16 / layout packing

    q_tokens = jax.random.randint(k_q, (B, Lq), 0, param["extracter_vocab_size"], jnp.int32)
    u_tokens = jax.random.randint(k_u, (B, Lu), 0, param["extracter_vocab_size"], jnp.int32)
    q_real_len = jnp.array([5, 8], jnp.int32)
    u_real_len = jnp.array([12, 7], jnp.int32)

    fwd = jax.jit(lambda qt, ut, ql, ul, pp: sou1m_forward(qt, ut, ql, ul, param, pp))
    qu_represent, rs = fwd(q_tokens, u_tokens, q_real_len, u_real_len, packed)
    jax.block_until_ready((qu_represent, rs))

    assert qu_represent.shape == (B, 2 * param["extracter_out_dim"])
    assert rs.shape == (B, param["MFC1_out"])
    print("KERNEL_OK")
</pallas_src>

<mosaic_0001>
module attributes {stable_mosaic.version = 11 : i64} {
  func.func @_sou1m_fused_kernel(%arg0: memref<20x1xi32, #tpu.memory_space<vmem>>, %arg1: memref<28x1xi32, #tpu.memory_space<vmem>>, %arg2: memref<2x1xi32, #tpu.memory_space<vmem>>, %arg3: memref<2x1xi32, #tpu.memory_space<vmem>>, %arg4: memref<56x16xbf16, #tpu.memory_space<vmem>>, %arg5: memref<16x24xbf16, #tpu.memory_space<vmem>>, %arg6: memref<1x8xf32, #tpu.memory_space<vmem>>, %arg7: memref<8x32xbf16, #tpu.memory_space<vmem>>, %arg8: memref<1x32xf32, #tpu.memory_space<vmem>>, %arg9: memref<32x16xbf16, #tpu.memory_space<vmem>>, %arg10: memref<1x16xf32, #tpu.memory_space<vmem>>, %arg11: memref<56x16xbf16, #tpu.memory_space<vmem>>, %arg12: memref<16x24xbf16, #tpu.memory_space<vmem>>, %arg13: memref<1x8xf32, #tpu.memory_space<vmem>>, %arg14: memref<8x32xbf16, #tpu.memory_space<vmem>>, %arg15: memref<1x32xf32, #tpu.memory_space<vmem>>, %arg16: memref<32x16xbf16, #tpu.memory_space<vmem>>, %arg17: memref<1x16xf32, #tpu.memory_space<vmem>>, %arg18: memref<32x32xbf16, #tpu.memory_space<vmem>>, %arg19: memref<1x32xf32, #tpu.memory_space<vmem>>, %arg20: memref<32x2xbf16, #tpu.memory_space<vmem>>, %arg21: memref<1x2xf32, #tpu.memory_space<vmem>>, %arg22: memref<2x32xf32, #tpu.memory_space<vmem>>, %arg23: memref<2x2xf32, #tpu.memory_space<vmem>>) attributes {dimension_semantics = [], scalar_prefetch = 0 : i64, scratch_operands = 0 : i64, tpu.core_type = #tpu.core_type<tc>} {
    %c0 = arith.constant 0 : index
    %c0_0 = arith.constant 0 : index
    %0 = vector.load %arg0[%c0, %c0_0] : memref<20x1xi32, #tpu.memory_space<vmem>>, vector<20x1xi32>
    %1 = tpu.iota {dimensions = array<i32: 1>} : vector<20x56xi32>
    %2 = vector.broadcast %0 : vector<20x1xi32> to vector<20x56xi32>
    %3 = arith.cmpi eq, %2, %1 : vector<20x56xi32>
    %4 = arith.extui %3 : vector<20x56xi1> to vector<20x56xi32>
    %5 = arith.sitofp %4 : vector<20x56xi32> to vector<20x56xf32>
    %6 = arith.truncf %5 : vector<20x56xf32> to vector<20x56xbf16>
    %c0_1 = arith.constant 0 : index
    %c0_2 = arith.constant 0 : index
    %7 = vector.load %arg4[%c0_1, %c0_2] : memref<56x16xbf16, #tpu.memory_space<vmem>>, vector<56x16xbf16>
    %cst = arith.constant dense<0.000000e+00> : vector<20x16xf32>
    %8 = tpu.matmul %6, %7, %cst {dimension_numbers = #tpu.dot_dimension_numbers<[1], [0], [0], [1], [0, 0, 1, 1], [], []>} : vector<20x56xbf16>, vector<56x16xbf16>, vector<20x16xf32> -> vector<20x16xf32>
    %9 = arith.truncf %8 : vector<20x16xf32> to vector<20x16xbf16>
    %c0_3 = arith.constant 0 : index
    %c0_4 = arith.constant 0 : index
    %10 = vector.load %arg5[%c0_3, %c0_4] : memref<16x24xbf16, #tpu.memory_space<vmem>>, vector<16x24xbf16>
    %cst_5 = arith.constant dense<0.000000e+00> : vector<20x24xf32>
    %11 = tpu.matmul %9, %10, %cst_5 {dimension_numbers = #tpu.dot_dimension_numbers<[1], [0], [0], [1], [0, 0, 1, 1], [], []>} : vector<20x16xbf16>, vector<16x24xbf16>, vector<20x24xf32> -> vector<20x24xf32>
    %12 = vector.shape_cast %11 : vector<20x24xf32> to vector<2x10x24xf32>
    %13 = vector.extract_strided_slice %12 {offsets = [0, 0, 0], sizes = [2, 8, 8], strides = [1, 1, 1]} : vector<2x10x24xf32> to vector<2x8x8xf32>
    %14 = vector.extract_strided_slice %12 {offsets = [0, 1, 8], sizes = [2, 8, 8], strides = [1, 1, 1]} : vector<2x10x24xf32> to vector<2x8x8xf32>
    %15 = arith.addf %13, %14 : vector<2x8x8xf32>
    %16 = vector.extract_strided_slice %12 {offsets = [0, 2, 16], sizes = [2, 8, 8], strides = [1, 1, 1]} : vector<2x10x24xf32> to vector<2x8x8xf32>
    %17 = arith.addf %15, %16 : vector<2x8x8xf32>
    %c0_6 = arith.constant 0 : index
    %c0_7 = arith.constant 0 : index
    %18 = vector.load %arg6[%c0_6, %c0_7] : memref<1x8xf32, #tpu.memory_space<vmem>>, vector<1x8xf32>
    %19 = vector.shape_cast %18 : vector<1x8xf32> to vector<1x1x8xf32>
    %20 = vector.broadcast %19 : vector<1x1x8xf32> to vector<2x8x8xf32>
    %21 = arith.addf %17, %20 : vector<2x8x8xf32>
    %cst_8 = arith.constant 0.000000e+00 : f32
    %22 = vector.broadcast %cst_8 : f32 to vector<2x8x8xf32>
    %23 = arith.maximumf %21, %22 : vector<2x8x8xf32>
    %24 = tpu.iota {dimensions = array<i32: 1>} : vector<2x8xi32>
    %c0_9 = arith.constant 0 : index
    %c0_10 = arith.constant 0 : index
    %25 = vector.load %arg2[%c0_9, %c0_10] : memref<2x1xi32, #tpu.memory_space<vmem>>, vector<2x1xi32>
    %26 = vector.broadcast %25 : vector<2x1xi32> to vector<2x8xi32>
    %27 = arith.cmpi slt, %24, %26 : vector<2x8xi32>
    %cst_11 = arith.constant 0.000000e+00 : f32
    %cst_12 = arith.constant -1.000000e+30 : f32
    %28 = vector.broadcast %cst_11 : f32 to vector<2x8xf32>
    %29 = vector.broadcast %cst_12 : f32 to vector<2x8xf32>
    %30 = arith.select %27, %28, %29 : vector<2x8xi1>, vector<2x8xf32>
    %31 = vector.shape_cast %30 : vector<2x8xf32> to vector<2x8x1xf32>
    %32 = vector.broadcast %31 : vector<2x8x1xf32> to vector<2x8x8xf32>
    %33 = arith.addf %23, %32 : vector<2x8x8xf32>
    %cst_13 = arith.constant dense<0xFF800000> : vector<2x8xf32>
    %34 = vector.multi_reduction <maximumf>, %33, %cst_13 [1] : vector<2x8x8xf32> to vector<2x8xf32>
    %35 = arith.truncf %34 : vector<2x8xf32> to vector<2x8xbf16>
    %c0_14 = arith.constant 0 : index
    %c0_15 = arith.constant 0 : index
    %36 = vector.load %arg7[%c0_14, %c0_15] : memref<8x32xbf16, #tpu.memory_space<vmem>>, vector<8x32xbf16>
    %cst_16 = arith.constant dense<0.000000e+00> : vector<2x32xf32>
    %37 = tpu.matmul %35, %36, %cst_16 {dimension_numbers = #tpu.dot_dimension_numbers<[1], [0], [0], [1], [0, 0, 1, 1], [], []>} : vector<2x8xbf16>, vector<8x32xbf16>, vector<2x32xf32> -> vector<2x32xf32>
    %c0_17 = arith.constant 0 : index
    %c0_18 = arith.constant 0 : index
    %38 = vector.load %arg8[%c0_17, %c0_18] : memref<1x32xf32, #tpu.memory_space<vmem>>, vector<1x32xf32>
    %39 = vector.broadcast %38 : vector<1x32xf32> to vector<2x32xf32>
    %40 = arith.addf %37, %39 : vector<2x32xf32>
    %cst_19 = arith.constant 0.000000e+00 : f32
    %41 = vector.broadcast %cst_19 : f32 to vector<2x32xf32>
    %42 = arith.maximumf %40, %41 : vector<2x32xf32>
    %43 = arith.truncf %42 : vector<2x32xf32> to vector<2x32xbf16>
    %c0_20 = arith.constant 0 : index
    %c0_21 = arith.constant 0 : index
    %44 = vector.load %arg9[%c0_20, %c0_21] : memref<32x16xbf16, #tpu.memory_space<vmem>>, vector<32x16xbf16>
    %cst_22 = arith.constant dense<0.000000e+00> : vector<2x16xf32>
    %45 = tpu.matmul %43, %44, %cst_22 {dimension_numbers = #tpu.dot_dimension_numbers<[1], [0], [0], [1], [0, 0, 1, 1], [], []>} : vector<2x32xbf16>, vector<32x16xbf16>, vector<2x16xf32> -> vector<2x16xf32>
    %c0_23 = arith.constant 0 : index
    %c0_24 = arith.constant 0 : index
    %46 = vector.load %arg10[%c0_23, %c0_24] : memref<1x16xf32, #tpu.memory_space<vmem>>, vector<1x16xf32>
    %47 = vector.broadcast %46 : vector<1x16xf32> to vector<2x16xf32>
    %48 = arith.addf %45, %47 : vector<2x16xf32>
    %c0_25 = arith.constant 0 : index
    %c0_26 = arith.constant 0 : index
    %49 = vector.load %arg1[%c0_25, %c0_26] : memref<28x1xi32, #tpu.memory_space<vmem>>, vector<28x1xi32>
    %50 = tpu.iota {dimensions = array<i32: 1>} : vector<28x56xi32>
    %51 = vector.broadcast %49 : vector<28x1xi32> to vector<28x56xi32>
    %52 = arith.cmpi eq, %51, %50 : vector<28x56xi32>
    %53 = arith.extui %52 : vector<28x56xi1> to vector<28x56xi32>
    %54 = arith.sitofp %53 : vector<28x56xi32> to vector<28x56xf32>
    %55 = arith.truncf %54 : vector<28x56xf32> to vector<28x56xbf16>
    %c0_27 = arith.constant 0 : index
    %c0_28 = arith.constant 0 : index
    %56 = vector.load %arg11[%c0_27, %c0_28] : memref<56x16xbf16, #tpu.memory_space<vmem>>, vector<56x16xbf16>
    %cst_29 = arith.constant dense<0.000000e+00> : vector<28x16xf32>
    %57 = tpu.matmul %55, %56, %cst_29 {dimension_numbers = #tpu.dot_dimension_numbers<[1], [0], [0], [1], [0, 0, 1, 1], [], []>} : vector<28x56xbf16>, vector<56x16xbf16>, vector<28x16xf32> -> vector<28x16xf32>
    %58 = arith.truncf %57 : vector<28x16xf32> to vector<28x16xbf16>
    %c0_30 = arith.constant 0 : index
    %c0_31 = arith.constant 0 : index
    %59 = vector.load %arg12[%c0_30, %c0_31] : memref<16x24xbf16, #tpu.memory_space<vmem>>, vector<16x24xbf16>
    %cst_32 = arith.constant dense<0.000000e+00> : vector<28x24xf32>
    %60 = tpu.matmul %58, %59, %cst_32 {dimension_numbers = #tpu.dot_dimension_numbers<[1], [0], [0], [1], [0, 0, 1, 1], [], []>} : vector<28x16xbf16>, vector<16x24xbf16>, vector<28x24xf32> -> vector<28x24xf32>
    %61 = vector.shape_cast %60 : vector<28x24xf32> to vector<2x14x24xf32>
    %62 = vector.extract_strided_slice %61 {offsets = [0, 0, 0], sizes = [2, 12, 8], strides = [1, 1, 1]} : vector<2x14x24xf32> to vector<2x12x8xf32>
    %63 = vector.extract_strided_slice %61 {offsets = [0, 1, 8], sizes = [2, 12, 8], strides = [1, 1, 1]} : vector<2x14x24xf32> to vector<2x12x8xf32>
    %64 = arith.addf %62, %63 : vector<2x12x8xf32>
    %65 = vector.extract_strided_slice %61 {offsets = [0, 2, 16], sizes = [2, 12, 8], strides = [1, 1, 1]} : vector<2x14x24xf32> to vector<2x12x8xf32>
    %66 = arith.addf %64, %65 : vector<2x12x8xf32>
    %c0_33 = arith.constant 0 : index
    %c0_34 = arith.constant 0 : index
    %67 = vector.load %arg13[%c0_33, %c0_34] : memref<1x8xf32, #tpu.memory_space<vmem>>, vector<1x8xf32>
    %68 = vector.shape_cast %67 : vector<1x8xf32> to vector<1x1x8xf32>
    %69 = vector.broadcast %68 : vector<1x1x8xf32> to vector<2x12x8xf32>
    %70 = arith.addf %66, %69 : vector<2x12x8xf32>
    %cst_35 = arith.constant 0.000000e+00 : f32
    %71 = vector.broadcast %cst_35 : f32 to vector<2x12x8xf32>
    %72 = arith.maximumf %70, %71 : vector<2x12x8xf32>
    %73 = tpu.iota {dimensions = array<i32: 1>} : vector<2x12xi32>
    %c0_36 = arith.constant 0 : index
    %c0_37 = arith.constant 0 : index
    %74 = vector.load %arg3[%c0_36, %c0_37] : memref<2x1xi32, #tpu.memory_space<vmem>>, vector<2x1xi32>
    %75 = vector.broadcast %74 : vector<2x1xi32> to vector<2x12xi32>
    %76 = arith.cmpi slt, %73, %75 : vector<2x12xi32>
    %cst_38 = arith.constant 0.000000e+00 : f32
    %cst_39 = arith.constant -1.000000e+30 : f32
    %77 = vector.broadcast %cst_38 : f32 to vector<2x12xf32>
    %78 = vector.broadcast %cst_39 : f32 to vector<2x12xf32>
    %79 = arith.select %76, %77, %78 : vector<2x12xi1>, vector<2x12xf32>
    %80 = vector.shape_cast %79 : vector<2x12xf32> to vector<2x12x1xf32>
    %81 = vector.broadcast %80 : vector<2x12x1xf32> to vector<2x12x8xf32>
    %82 = arith.addf %72, %81 : vector<2x12x8xf32>
    %cst_40 = arith.constant dense<0xFF800000> : vector<2x8xf32>
    %83 = vector.multi_reduction <maximumf>, %82, %cst_40 [1] : vector<2x12x8xf32> to vector<2x8xf32>
    %84 = arith.truncf %83 : vector<2x8xf32> to vector<2x8xbf16>
    %c0_41 = arith.constant 0 : index
    %c0_42 = arith.constant 0 : index
    %85 = vector.load %arg14[%c0_41, %c0_42] : memref<8x32xbf16, #tpu.memory_space<vmem>>, vector<8x32xbf16>
    %cst_43 = arith.constant dense<0.000000e+00> : vector<2x32xf32>
    %86 = tpu.matmul %84, %85, %cst_43 {dimension_numbers = #tpu.dot_dimension_numbers<[1], [0], [0], [1], [0, 0, 1, 1], [], []>} : vector<2x8xbf16>, vector<8x32xbf16>, vector<2x32xf32> -> vector<2x32xf32>
    %c0_44 = arith.constant 0 : index
    %c0_45 = arith.constant 0 : index
    %87 = vector.load %arg15[%c0_44, %c0_45] : memref<1x32xf32, #tpu.memory_space<vmem>>, vector<1x32xf32>
    %88 = vector.broadcast %87 : vector<1x32xf32> to vector<2x32xf32>
    %89 = arith.addf %86, %88 : vector<2x32xf32>
    %cst_46 = arith.constant 0.000000e+00 : f32
    %90 = vector.broadcast %cst_46 : f32 to vector<2x32xf32>
    %91 = arith.maximumf %89, %90 : vector<2x32xf32>
    %92 = arith.truncf %91 : vector<2x32xf32> to vector<2x32xbf16>
    %c0_47 = arith.constant 0 : index
    %c0_48 = arith.constant 0 : index
    %93 = vector.load %arg16[%c0_47, %c0_48] : memref<32x16xbf16, #tpu.memory_space<vmem>>, vector<32x16xbf16>
    %cst_49 = arith.constant dense<0.000000e+00> : vector<2x16xf32>
    %94 = tpu.matmul %92, %93, %cst_49 {dimension_numbers = #tpu.dot_dimension_numbers<[1], [0], [0], [1], [0, 0, 1, 1], [], []>} : vector<2x32xbf16>, vector<32x16xbf16>, vector<2x16xf32> -> vector<2x16xf32>
    %c0_50 = arith.constant 0 : index
    %c0_51 = arith.constant 0 : index
    %95 = vector.load %arg17[%c0_50, %c0_51] : memref<1x16xf32, #tpu.memory_space<vmem>>, vector<1x16xf32>
    %96 = vector.broadcast %95 : vector<1x16xf32> to vector<2x16xf32>
    %97 = arith.addf %94, %96 : vector<2x16xf32>
    %c0_52 = arith.constant 0 : index
    %c0_53 = arith.constant 0 : index
    %98 = vector.load %arg22[%c0_52, %c0_53] : memref<2x32xf32, #tpu.memory_space<vmem>>, vector<2x16xf32>
    tpu.vector_store %arg22[%c0_52, %c0_53], %48 {strides = array<i32>} : memref<2x32xf32, #tpu.memory_space<vmem>>, vector<2x16xf32>,
    %c0_54 = arith.constant 0 : index
    %c16 = arith.constant 16 : index
    %99 = vector.load %arg22[%c0_54, %c16] : memref<2x32xf32, #tpu.memory_space<vmem>>, vector<2x16xf32>
    tpu.vector_store %arg22[%c0_54, %c16], %97 {strides = array<i32>} : memref<2x32xf32, #tpu.memory_space<vmem>>, vector<2x16xf32>,
    %c0_55 = arith.constant 0 : index
    %c0_56 = arith.constant 0 : index
    %100 = vector.load %arg22[%c0_55, %c0_56] : memref<2x32xf32, #tpu.memory_space<vmem>>, vector<2x32xf32>
    %101 = arith.truncf %100 : vector<2x32xf32> to vector<2x32xbf16>
    %c0_57 = arith.constant 0 : index
    %c0_58 = arith.constant 0 : index
    %102 = vector.load %arg18[%c0_57, %c0_58] : memref<32x32xbf16, #tpu.memory_space<vmem>>, vector<32x32xbf16>
    %cst_59 = arith.constant dense<0.000000e+00> : vector<2x32xf32>
    %103 = tpu.matmul %101, %102, %cst_59 {dimension_numbers = #tpu.dot_dimension_numbers<[1], [0], [0], [1], [0, 0, 1, 1], [], []>} : vector<2x32xbf16>, vector<32x32xbf16>, vector<2x32xf32> -> vector<2x32xf32>
    %c0_60 = arith.constant 0 : index
    %c0_61 = arith.constant 0 : index
    %104 = vector.load %arg19[%c0_60, %c0_61] : memref<1x32xf32, #tpu.memory_space<vmem>>, vector<1x32xf32>
    %105 = vector.broadcast %104 : vector<1x32xf32> to vector<2x32xf32>
    %106 = arith.addf %103, %105 : vector<2x32xf32>
    %107 = arith.truncf %106 : vector<2x32xf32> to vector<2x32xbf16>
    %c0_62 = arith.constant 0 : index
    %c0_63 = arith.constant 0 : index
    %108 = vector.load %arg20[%c0_62, %c0_63] : memref<32x2xbf16, #tpu.memory_space<vmem>>, vector<32x2xbf16>
    %cst_64 = arith.constant dense<0.000000e+00> : vector<2x2xf32>
    %109 = tpu.matmul %107, %108, %cst_64 {dimension_numbers = #tpu.dot_dimension_numbers<[1], [0], [0], [1], [0, 0, 1, 1], [], []>} : vector<2x32xbf16>, vector<32x2xbf16>, vector<2x2xf32> -> vector<2x2xf32>
    %c0_65 = arith.constant 0 : index
    %c0_66 = arith.constant 0 : index
    %110 = vector.load %arg21[%c0_65, %c0_66] : memref<1x2xf32, #tpu.memory_space<vmem>>, vector<1x2xf32>
    %111 = vector.broadcast %110 : vector<1x2xf32> to vector<2x2xf32>
    %112 = arith.addf %109, %111 : vector<2x2xf32>
    %c0_67 = arith.constant 0 : index
    %c0_68 = arith.constant 0 : index
    %113 = vector.load %arg23[%c0_67, %c0_68] : memref<2x2xf32, #tpu.memory_space<vmem>>, vector<2x2xf32>
    tpu.vector_store %arg23[%c0_67, %c0_68], %112 {strides = array<i32>} : memref<2x2xf32, #tpu.memory_space<vmem>>, vector<2x2xf32>,
    return
  }
}

</mosaic_0001>

<bundles_post_ra>
// kernel: _lambda_.1
= control target key start
LH: loop header
LB: loop body
LE: loop exit
PB: predicated region body
PF: predicated region fallthrough
CT: control target
= control target key end

     0   :  { %s1937_s0 = inlined_call_operand.vmem [shape: s32[20,1], index: 0, kind: input, shape index: {}]   ;;  %s1938_s1 = inlined_call_operand.vmem [shape: s32[28,1], index: 1, kind: input, shape index: {}]   ;;  %s1939_s2 = inlined_call_operand.vmem [shape: s32[2,1], index: 2, kind: input, shape index: {}]   ;;  %s1940_s3 = inlined_call_operand.vmem [shape: s32[2,1], index: 3, kind: input, shape index: {}]   ;;  %s1941_s4 = inlined_call_operand.vmem [shape: bf16[56,16], index: 4, kind: input, shape index: {}]   ;;  %s1942_s5 = inlined_call_operand.vmem [shape: bf16[16,24], index: 5, kind: input, shape index: {}]   ;;  %s1943_s6 = inlined_call_operand.vmem [shape: f32[1,8], index: 6, kind: input, shape index: {}]   ;;  %s1944_s7 = inlined_call_operand.vmem [shape: bf16[8,32], index: 7, kind: input, shape index: {}]   ;;  %s1945_s8 = inlined_call_operand.vmem [shape: f32[1,32], index: 8, kind: input, shape index: {}]   ;;  %s1946_s9 = inlined_call_operand.vmem [shape: bf16[32,16], index: 9, kind: input, shape index: {}]   ;;  %s1947_s10 = inlined_call_operand.vmem [shape: f32[1,16], index: 10, kind: input, shape index: {}]   ;;  %s1948_s11 = inlined_call_operand.vmem [shape: bf16[56,16], index: 11, kind: input, shape index: {}]   ;;  %s1949_s12 = inlined_call_operand.vmem [shape: bf16[16,24], index: 12, kind: input, shape index: {}]   ;;  %s1950_s13 = inlined_call_operand.vmem [shape: f32[1,8], index: 13, kind: input, shape index: {}]   ;;  %s1951_s14 = inlined_call_operand.vmem [shape: bf16[8,32], index: 14, kind: input, shape index: {}]   ;;  %s1952_s15 = inlined_call_operand.vmem [shape: f32[1,32], index: 15, kind: input, shape index: {}]   ;;  %s1953_s16 = inlined_call_operand.vmem [shape: bf16[32,16], index: 16, kind: input, shape index: {}]   ;;  %s1954_s17 = inlined_call_operand.vmem [shape: f32[1,16], index: 17, kind: input, shape index: {}]   ;;  %s1955_s18 = inlined_call_operand.vmem [shape: bf16[32,32], index: 18, kind: input, shape index: {}]   ;;  %s1956_s19 = inlined_call_operand.vmem [shape: f32[1,32], index: 19, kind: input, shape index: {}]   ;;  %s1957_s20 = inlined_call_operand.vmem [shape: bf16[32,2], index: 20, kind: input, shape index: {}]   ;;  %s1958_s21 = inlined_call_operand.vmem [shape: f32[1,2], index: 21, kind: input, shape index: {}]   ;;  %s1959_s22 = inlined_call_operand.hbm [shape: f32[2,32], index: 22, kind: output, shape index: {0}]   ;;  %s1960_s23 = inlined_call_operand.hbm [shape: f32[2,2], index: 23, kind: output, shape index: {1}]  }
   0x1   :  { %1964 = sst [smem:[#allocation8_spill]] %s1937_s0 }
   0x2   :  { %1965 = sst [smem:[#allocation9_spill]] %s1938_s1 }
   0x3   :  { %1966 = sst [smem:[#allocation10_spill]] %s1939_s2 }
   0x4   :  { %1967 = sst [smem:[#allocation11_spill]] %s1940_s3 }
   0x5   :  { %1968 = sst [smem:[#allocation12_spill]] %s1941_s4 }
   0x6   :  { %1969 = sst [smem:[#allocation13_spill]] %s1942_s5 }
   0x7   :  { %1970 = sst [smem:[#allocation14_spill]] %s1943_s6 }
   0x8   :  { %1971 = sst [smem:[#allocation15_spill]] %s1944_s7 }
   0x9   :  { %29 = vsyncpa [#allocation3], 0  ;;  %s1972_s24 = sld [smem:[#allocation8_spill]]  ;;  %v1363_v2 = vmov 0   ;;  %vm136_vm0 = vcmask 1043456  }
   0xa   :  { %1295 = vset.pattern.permute.xlu0 %v1363_v2  ;;  %1296 = vset.pattern.permute.xlu1 %v1363_v2  ;;  %s1973_s2 = sld [smem:[#allocation12_spill]] }
   0xf   :  { %v76_v0 = vld [vmem:[%s1972_s24] sm:$0xff]  ;;  %v78_v1 = vld [vmem:[%s1972_s24 + $0x10] sm:$0xf] }
  0x10   :  { %v107_v3 = vld [vmem:[%s1973_s2 + $0x18] sm:$0xf]  ;;  %82 = vperm.xlu0 %1295, %v76_v0   ;;  %88 = vperm.xlu1 %1296, %v78_v1  }
  0x11   :  { %v121_v4 = vunpack.c.l.b16 %v107_v3 }
  0x13   :  { %v125_v5 = vpack.c.b16 %v121_v4, %v121_v4 }
  0x14   :  { %30 = vsyncpa [#allocation5], 0  ;;  %v77_v7 = vld [vmem:[%s1972_s24 + $0x8] sm:$0xff]  ;;  %s1974_s29 = sld [smem:[#allocation10_spill]]  ;;  %v1269_v9 = vld [vmem:[%s1973_s2 + $0x10] sm:$0xff]  ;;  %v79_v12 = vlaneseq  ;;  %v1364_v16 = vmov 0.0  }
  0x15   :  { %v138_v6 = vsel %vm136_vm0, %v125_v5, 0  ;;  %v1268_v10 = vld [vmem:[%s1973_s2 + $0x8] sm:$0xff]  ;;  %v1267_v11 = vld [vmem:[%s1973_s2] sm:$0xff]  ;;  %vm129_vm3 = vcmask 457728   ;;  %s1975_s26 = sld [smem:[#allocation13_spill]]  ;;  %vm168_vm5 = vcmask 130048  }
  0x16   :  { %144 = vmatpush.bf16.msra.mxu0 %v138_v6  ;;  %v1522_v14 = vand.u32 127, %v79_v12  ;;  %v1537_v30 = vshrl.u32 %v79_v12, 7  ;;  %vm209_vm6 = vcmask 1040384   ;;  %vm210_vm7 = vcmask 1042434   ;;  %s1365_s2 = smov 112   ;;  %s1366_s6 = smov 120  }
  0x17   :  { %vm211_vm8 = vmor %vm209_vm6, %vm210_vm7  ;;  %vm212_vm9 = vcmask 1044484   ;;  %vm214_vm11 = vcmask 1046534   ;;  %v1367_v4 = vmov -1e+30   ;;  %s1978_s28 = sld [smem:[#allocation9_spill]]  ;;  %vm429_vm14 = vcmask 64512  }
  0x18   :  { %85 = vperm.xlu0 %1295, %v77_v7   ;;  %1297 = vset.pattern.permute.xlu2 %v1537_v30  ;;  %vm213_vm10 = vmor %vm211_vm8, %vm212_vm9  ;;  %s1979_s1 = sld [smem:[#allocation14_spill]]  ;;  %vm455_vm15 = vcmask 1041409   ;;  %vm1061_vm8 = vcmask 123904   ;;  %s1372_s27 = smov 16   ;;  %vm1144_vm9 = vcmask 9216  }
  0x19   :  { %vm1560_vm12 = vmor %vm213_vm10, %vm214_vm11  ;;  %s1980_s7 = sld [smem:[#allocation15_spill]]  ;;  %s1164_s30 = sshll.u32 %s1960_s23, 4  ;;  %s1165_s30 = int_to_ptr.hbm [resolvable:$true] %s1164_s30 }
  0x1a   :  { %v332_v8 = vld [vmem:[%s1974_s29] sm:$0x3]  ;;  %145 = vmatpush.bf16.msra.mxu0 %v1269_v9  ;;  %s1981_s4 = sld [smem:[#allocation11_spill]] }
  0x1b   :  { %334 = vperm.xlu1 %1296, %v332_v8   ;;  %v1270_v23 = vld [vmem:[%s1975_s26] sm:$0xff] }
  0x1c   :  { %182 = vmatpush.bf16.msra.mxu1 %v1270_v23 }
  0x1d   :  { %v516_v6 = vld [vmem:[%s1978_s28] sm:$0xff]  ;;  %v518_v9 = vld [vmem:[%s1978_s28 + $0x10] sm:$0xff]  ;;  %v519_v12 = vld [vmem:[%s1978_s28 + $0x18] sm:$0xf] }
  0x1e   :  { %146 = vmatpush.bf16.msra.mxu0 %v1268_v10 }
  0x20   :  { %1298 = vset.pattern.permute.xlu0 %v1537_v30 }
  0x22   :  { %147 = vmatpush.bf16.msra.mxu0 %v1267_v11  ;;  %v517_v11 = vld [vmem:[%s1978_s28 + $0x8] sm:$0xff] }
  0x82   :  { %v83_v13 = vpop.permute.xlu0 %82  ;;  %v89_v20 = vpop.permute.xlu1 %88 }
  0x83   :  { %vm90_vm1 = vcmp.eq.s32.totalorder %v83_v13, %v1522_v14  ;;  %vm92_vm4 = vcmp.eq.s32.totalorder %v89_v20, %v1522_v14 }
  0x84   :  { %v1178_v17 = vsel %vm90_vm1, 1.0, %v1364_v16  ;;  %v1180_v21 = vsel %vm92_vm4, 1.0, %v1364_v16 }
  0x85   :  { %v100_v22 = vpack.c.bf16 %v1180_v21, %v1180_v21 }
  0x8a   :  { %v86_v15 = vpop.permute.xlu0 %85 }
  0x8b   :  { %vm91_vm2 = vcmp.eq.s32.totalorder %v86_v15, %v1522_v14 }
  0x8c   :  { %v1179_v18 = vsel %vm91_vm2, 1.0, %v1364_v16 }
  0x8d   :  { %v99_v19 = vpack.c.bf16 %v1179_v18, %v1178_v17  ;;  %v335_v62 = vpop.permute.xlu1 %334 }
  0x8e   :  { %vm336_vm13 = vcmp.lt.s32.totalorder %v1522_v14, %v335_v62 }
  0x8f   :  { %1193 = vmatmul.msk.bf16.vlgmr.msra.gmra.mxu0 %vm129_vm3, %v99_v19  ;;  %v337_v5 = vsel %vm336_vm13, 0.0, %v1367_v4 }
  0x90   :  { %v345_v7 = vperm.slane %v337_v5, 1  ;;  %v338_v10 = vperm.slane %v337_v5, 0 }
  0x9f   :  { %1194 = vmatmul.msk.bf16.gmra.mxu0 %vm129_vm3, %v100_v22 }
 0x10c   :  { %v149_v24 = vpop.f32.mrf.mxu0 }
 0x114   :  { %v151_v25 = vpop.f32.mrf.mxu0 }
 0x115   :  { %v158_v26 = vpack.c.bf16 %v151_v25, %v149_v24 }
 0x117   :  { %1199 = vmatmul.msk.bf16.vlgmr.msra.gmra.mxu1 %vm168_vm5, %v158_v26 }
 0x11c   :  { %v154_v27 = vpop.f32.mrf.mxu0 }
 0x11d   :  { %v159_v28 = vpack.c.bf16 %v154_v27, %v154_v27 }
 0x124   :  { %v156_v29 = vpop.f32.mrf.mxu0 }
 0x127   :  { %1200 = vmatmul.msk.bf16.gmra.mxu1 %vm168_vm5, %v159_v28 }
 0x194   :  { %v1541_v31 = vpop.f32.mrf.mxu1 }
 0x195   :  { %v1544_v32 = vrot.slane %v1541_v31, 6  ;;  %v1547_v33 = vrot.slane %v1541_v31, 4  ;;  %v1550_v34 = vrot.slane %v1541_v31, 2  ;;  %v1201_v40 = vrot.slane %v1541_v31, 9 }
 0x197   :  { %278 = vrot.lane.b32.xlu2 %v1544_v32, %s1365_s2  ;;  %276 = vrot.lane.b32.xlu1 %v1547_v33, %s1365_s2  ;;  %v221_v35 = vrot.slane %v1547_v33, 7  ;;  %v218_v36 = vrot.slane %v1550_v34, 7  ;;  %v224_v41 = vrot.slane %v1544_v32, 7 }
 0x198   :  { %274 = vrot.lane.b32.xlu0 %v1550_v34, %s1365_s2 }
 0x199   :  { %v223_v38 = vrot.slane %v221_v35, 2  ;;  %v219_v43 = vsel %vm1560_vm12, %v1201_v40, %v218_v36  ;;  %v220_v45 = vrot.slane %v218_v36, 2  ;;  %v226_v48 = vrot.slane %v224_v41, 2 }
 0x19a   :  { %v1368_v40 = vmov 269488144  }
 0x19b   :  { %v225_v44 = vsel %vm1560_vm12, %v223_v38, %v224_v41  ;;  %v222_v50 = vsel %vm1560_vm12, %v220_v45, %v221_v35  ;;  %v355_v41 = vunpack.c.l.s4 %v1368_v40 }
 0x19c   :  { %v1564_v39 = vpop.f32.mrf.mxu1 }
 0x19d   :  { %v1569_v42 = vrot.slane %v1564_v39, 4  ;;  %v227_v46 = vrot.slane %v1564_v39, 7  ;;  %v1583_v49 = vrot.slane %v1564_v39, 6  ;;  %v199_v59 = vrot.slane %v1564_v39, 2 }
 0x19f   :  { %242 = vrot.lane.b32.xlu2 %v219_v43, %s1366_s6  ;;  %282 = vrot.lane.b32.xlu1 %v1569_v42, %s1365_s2  ;;  %v228_v51 = vsel %vm1560_vm12, %v226_v48, %v227_v46  ;;  %v231_v52 = vrot.slane %v1569_v42, 7  ;;  %v234_v53 = vrot.slane %v1583_v49, 7  ;;  %v1202_v61 = vrot.slane %v199_v59, 9 }
 0x1a0   :  { %246 = vrot.lane.b32.xlu0 %v225_v44, %s1366_s6  ;;  %v1369_v46 = vmov 842150450   ;;  %v1370_v48 = vmov 1414812756  }
 0x1a1   :  { %v233_v55 = vrot.slane %v231_v52, 2  ;;  %v236_v56 = vrot.slane %v234_v53, 2  ;;  %v232_v0 = vsel %vm1560_vm12, %v1202_v61, %v231_v52 }
 0x1a3   :  { %v235_v60 = vsel %vm1560_vm12, %v233_v55, %v234_v53  ;;  %v446_v53 = vld [vmem:[%s1980_s7] sm:$0xf] }
 0x1a4   :  { %v1580_v47 = vpop.f32.mrf.mxu1 }
 0x1a5   :  { %v237_v54 = vrot.slane %v1580_v47, 7  ;;  %v202_v63 = vrot.slane %v1580_v47, 2 }
 0x1a7   :  { %244 = vrot.lane.b32.xlu2 %v222_v50, %s1366_s6  ;;  %248 = vrot.lane.b32.xlu1 %v228_v51, %s1366_s6  ;;  %v238_v58 = vsel %vm1560_vm12, %v236_v56, %v237_v54  ;;  %v240_v1 = vrot.slane %v202_v63, 7  ;;  %v239_v3 = vrot.slane %v237_v54, 2  ;;  %v1371_v50 = vmov 1987475062  }
 0x1a8   :  { %280 = vrot.lane.b32.xlu0 %v1564_v39, %s1365_s2  ;;  %v367_v51 = vunpack.c.l.s4 %v1371_v50  ;;  %v462_v56 = vsel %vm136_vm0, %v446_v53, 0  ;;  %v1275_v53 = vld [vmem:[%s1948_s11 + $0x10] sm:$0xff] }
 0x1a9   :  { %v241_v8 = vsel %vm1560_vm12, %v239_v3, %v240_v1  ;;  %471 = vmatpush.bf16.msra.mxu2 %v462_v56 }
 0x1aa   :  { %v1659_v62 = vunpack.c.0.s8 %v367_v51 }
 0x1ac   :  { %v191_v57 = vpop.f32.mrf.mxu1 }
 0x1af   :  { %284 = vrot.lane.b32.xlu2 %v1583_v49, %s1365_s2  ;;  %254 = vrot.lane.b32.xlu1 %v238_v58, %s1366_s6 }
 0x1b0   :  { %252 = vrot.lane.b32.xlu0 %v235_v60, %s1366_s6 }
 0x1b7   :  { %250 = vrot.lane.b32.xlu2 %v232_v0, %s1366_s6  ;;  %288 = vrot.lane.b32.xlu1 %v202_v63, %s1365_s2 }
 0x1b8   :  { %286 = vrot.lane.b32.xlu0 %v1580_v47, %s1365_s2 }
 0x1bf   :  { %521 = vperm.xlu1 %1296, %v516_v6   ;;  %256 = vrot.lane.b32.xlu2 %v241_v8, %s1366_s6 }
 0x1c0   :  { %350 = vperm.xlu0 %1298, %v345_v7  }
 0x1c7   :  { %527 = vperm.xlu1 %1296, %v518_v9   ;;  %343 = vperm.xlu2 %1297, %v338_v10  }
 0x1c8   :  { %1300 = vset.pattern.permute.xlu0 %v1363_v2 }
 0x1cf   :  { %1299 = vset.pattern.permute.xlu2 %v1363_v2  ;;  %v1639_v2 = vld [vmem:[%s1979_s1] ss:$0 sm:$0xff] }
 0x1d0   :  { %524 = vperm.xlu2 %1299, %v517_v11   ;;  %v310_v27 = vrot.slane %v1639_v2, 2  ;;  %v311_v35 = vrot.slane %v1639_v2, 4 }
 0x1d8   :  { %530 = vperm.xlu2 %1299, %v519_v12  }
 0x1e0   :  { %1301 = vset.pattern.permute.xlu2 %v1537_v30 }
 0x1f1   :  { %v279_v13 = vpop.permute.xlu2 %278 }
 0x1f9   :  { %v243_v15 = vpop.permute.xlu2 %242 }
 0x1fa   :  { %v266_v25 = vadd.f32 %v243_v15, %v1541_v31  ;;  %v363_v31 = vunpack.c.l.s4 %v1370_v48 }
 0x1fc   :  { %v1657_v60 = vunpack.c.0.s8 %v363_v31 }
 0x201   :  { %v245_v17 = vpop.permute.xlu2 %244 }
 0x202   :  { %v267_v26 = vadd.f32 %v245_v17, %v1550_v34  ;;  %v312_v34 = vrot.slane %v1639_v2, 6 }
 0x209   :  { %v277_v18 = vpop.permute.xlu1 %276  ;;  %v1634_v19 = vpop.permute.xlu2 %284 }
 0x20a   :  { %v275_v20 = vpop.permute.xlu0 %274  ;;  %v299_v28 = vadd.f32 %v277_v18, %v267_v26 }
 0x20b   :  { %v298_v29 = vadd.f32 %v275_v20, %v266_v25 }
 0x20c   :  { %v317_v54 = vadd.f32 %v310_v27, %v299_v28 }
 0x20d   :  { %v316_v55 = vadd.f32 %v1639_v2, %v298_v29 }
 0x20e   :  { %v325_v63 = vmax.f32 %v317_v54, 0.0 }
 0x20f   :  { %v324_v0 = vmax.f32 %v316_v55, 0.0  ;;  %v1274_v55 = vld [vmem:[%s1948_s11 + $0x8] sm:$0xff] }
 0x211   :  { %v283_v21 = vpop.permute.xlu1 %282  ;;  %v251_v22 = vpop.permute.xlu2 %250 }
 0x212   :  { %v247_v23 = vpop.permute.xlu0 %246  ;;  %v270_v17 = vadd.f32 %v251_v22, %v199_v59 }
 0x213   :  { %v268_v24 = vadd.f32 %v247_v23, %v1547_v33  ;;  %v359_v33 = vunpack.c.l.s4 %v1369_v46 }
 0x214   :  { %v302_v23 = vadd.f32 %v283_v21, %v270_v17 }
 0x215   :  { %v300_v43 = vadd.f32 %v279_v13, %v268_v24  ;;  %v1655_v58 = vunpack.c.0.s8 %v359_v33 }
 0x216   :  { %v320_v39 = vadd.f32 %v1639_v2, %v302_v23 }
 0x217   :  { %v318_v57 = vadd.f32 %v311_v35, %v300_v43 }
 0x218   :  { %v328_v43 = vmax.f32 %v320_v39, 0.0 }
 0x219   :  { %v249_v36 = vpop.permute.xlu1 %248  ;;  %v257_v38 = vpop.permute.xlu2 %256  ;;  %v326_v5 = vmax.f32 %v318_v57, 0.0  ;;  %v1273_v57 = vld [vmem:[%s1948_s11] sm:$0xff] }
 0x21a   :  { %v281_v44 = vpop.permute.xlu0 %280  ;;  %v269_v45 = vadd.f32 %v249_v36, %v1544_v32  ;;  %v1653_v32 = vunpack.c.0.s8 %v355_v41  ;;  %v273_v26 = vadd.f32 %v257_v38, %v1580_v47 }
 0x21c   :  { %v301_v52 = vadd.f32 %v281_v44, %v269_v45 }
 0x21e   :  { %v319_v61 = vadd.f32 %v312_v34, %v301_v52 }
 0x220   :  { %v327_v10 = vmax.f32 %v319_v61, 0.0 }
 0x221   :  { %v255_v1 = vpop.permute.xlu1 %254  ;;  %v344_v3 = vpop.permute.xlu2 %343 }
 0x222   :  { %v253_v6 = vpop.permute.xlu0 %252  ;;  %v357_v7 = vperm.slane %v344_v3, %v1653_v32  ;;  %v361_v8 = vperm.slane %v344_v3, %v1655_v58  ;;  %v365_v9 = vperm.slane %v344_v3, %v1657_v60  ;;  %v369_v11 = vperm.slane %v344_v3, %v1659_v62 }
 0x223   :  { %v271_v20 = vadd.f32 %v253_v6, %v1569_v42  ;;  %v272_v24 = vadd.f32 %v255_v1, %v1583_v49  ;;  %v552_v49 = vld [vmem:[%s1948_s11 + $0x18] sm:$0xf] }
 0x224   :  { %v394_v12 = vadd.f32 %v357_v7, %v324_v0  ;;  %v395_v13 = vadd.f32 %v361_v8, %v325_v63  ;;  %v396_v15 = vadd.f32 %v365_v9, %v326_v5  ;;  %v397_v18 = vadd.f32 %v369_v11, %v327_v10 }
 0x225   :  { %v303_v28 = vadd.f32 %v1634_v19, %v271_v20  ;;  %v566_v38 = vunpack.c.l.b16 %v552_v49 }
 0x226   :  { %410 = vst [vmem:[#allocation1] ss:$4 sm:$0xff] %v394_v12 }
 0x227   :  { %412 = vst [vmem:[#allocation1 + $0x1] ss:$4 sm:$0xff] %v395_v13  ;;  %v321_v59 = vadd.f32 %v310_v27, %v303_v28  ;;  %v570_v33 = vpack.c.b16 %v566_v38, %v566_v38 }
 0x228   :  { %414 = vst [vmem:[#allocation1 + $0x2] ss:$4 sm:$0xff] %v396_v15 }
 0x229   :  { %416 = vst [vmem:[#allocation1 + $0x3] ss:$4 sm:$0xff] %v397_v18  ;;  %v289_v25 = vpop.permute.xlu1 %288  ;;  %v329_v21 = vmax.f32 %v321_v59, 0.0  ;;  %v581_v52 = vsel %vm136_vm0, %v570_v33, 0  ;;  %v1272_v59 = vld [vmem:[%s1946_s9 + $0x8] sm:$0xff] }
 0x22a   :  { %v287_v29 = vpop.permute.xlu0 %286  ;;  %v305_v40 = vadd.f32 %v289_v25, %v273_v26  ;;  %587 = vmatpush.bf16.msrb.mxu2 %v581_v52  ;;  %v525_v23 = vpop.permute.xlu2 %524  ;;  %509 = vmatpush.bf16.msra.mxu3 %v1272_v59 }
 0x22b   :  { %v304_v36 = vadd.f32 %v287_v29, %v272_v24  ;;  %vm533_vm2 = vcmp.eq.s32.totalorder %v525_v23, %v1522_v14 }
 0x22c   :  { %v323_v42 = vadd.f32 %v312_v34, %v305_v40  ;;  %v1214_v25 = vsel %vm533_vm2, 1.0, %v1364_v16 }
 0x22d   :  { %v322_v22 = vadd.f32 %v311_v35, %v304_v36 }
 0x22e   :  { %v331_v46 = vmax.f32 %v323_v42, 0.0  ;;  %588 = vmatpush.bf16.msrb.mxu2 %v1275_v53  ;;  %v1276_v42 = vld [vmem:[%s1949_s12] sm:$0xff] }
 0x22f   :  { %v330_v44 = vmax.f32 %v322_v22, 0.0  ;;  %v1271_v22 = vld [vmem:[%s1946_s9] sm:$0xff] }
 0x230   :  { %v417_v41 = vld.sshfl [vmem:[#allocation1] sm:$0xff pattern:$0x73625140]  ;;  %510 = vmatpush.bf16.msra.mxu3 %v1271_v22 }
 0x231   :  { %v430_v19 = vsel %vm429_vm14, %v417_v41, -inf  ;;  %v522_v20 = vpop.permute.xlu1 %521 }
 0x232   :  { %v351_v47 = vpop.permute.xlu0 %350  ;;  %v431_v50 = vrot.slane %v430_v19, 4  ;;  %589 = vmatpush.bf16.msrb.mxu2 %v1274_v55  ;;  %vm532_vm1 = vcmp.eq.s32.totalorder %v522_v20, %v1522_v14  ;;  %v531_v29 = vpop.permute.xlu2 %530 }
 0x233   :  { %v373_v45 = vperm.slane %v351_v47, %v1653_v32  ;;  %v377_v2 = vperm.slane %v351_v47, %v1655_v58  ;;  %v381_v27 = vperm.slane %v351_v47, %v1657_v60  ;;  %v385_v35 = vperm.slane %v351_v47, %v1659_v62 }
 0x234   :  { %v432_v54 = vmax.f32 %v430_v19, %v431_v50  ;;  %v1213_v24 = vsel %vm532_vm1, 1.0, %v1364_v16  ;;  %vm535_vm6 = vcmp.eq.s32.totalorder %v531_v29, %v1522_v14  ;;  %625 = vmatpush.bf16.msrb.mxu3 %v1276_v42 }
 0x235   :  { %v398_v48 = vadd.f32 %v373_v45, %v328_v43  ;;  %v399_v31 = vadd.f32 %v377_v2, %v329_v21  ;;  %v400_v34 = vadd.f32 %v381_v27, %v330_v44  ;;  %v401_v51 = vadd.f32 %v385_v35, %v331_v46  ;;  %v827_v43 = vld [vmem:[%s1981_s4] sm:$0x3]  ;;  %s1373_s4 = smov [#allocation2]  }
 0x236   :  { %v433_v56 = vrot.slane %v432_v54, 2  ;;  %590 = vmatpush.bf16.msrb.mxu2 %v1273_v57  ;;  %v544_v26 = vpack.c.bf16 %v1214_v25, %v1213_v24  ;;  %v1216_v40 = vsel %vm535_vm6, 1.0, %v1364_v16  ;;  %829 = vperm.xlu0 %1300, %v827_v43   ;;  %v842_v46 = vadd.s32 8, %v1537_v30 }
 0x237   :  { %419 = vst [vmem:[#allocation1 + $0x20] ss:$4 sm:$0xff] %v398_v48 }
 0x238   :  { %421 = vst [vmem:[#allocation1 + $0x21] ss:$4 sm:$0xff] %v399_v31  ;;  %v434_v63 = vmax.f32 %v432_v54, %v433_v56 }
 0x239   :  { %423 = vst [vmem:[#allocation1 + $0x22] ss:$4 sm:$0xff] %v400_v34  ;;  %v528_v28 = vpop.permute.xlu1 %527  ;;  %v1305_v34 = vld [vmem:[%s1947_s10] ss:$0 sm:$0xff]  ;;  %s1153_s10 = sshll.u32 %s1959_s22, 4  ;;  %s1154_s10 = int_to_ptr.hbm [resolvable:$true] %s1153_s10 }
 0x23a   :  { %425 = vst [vmem:[#allocation1 + $0x23] ss:$4 sm:$0xff] %v401_v51  ;;  %v435_v3 = vrot.slane %v434_v63, 1  ;;  %vm534_vm4 = vcmp.eq.s32.totalorder %v528_v28, %v1522_v14 }
 0x23b   :  { %v1215_v36 = vsel %vm534_vm4, 1.0, %v1364_v16  ;;  %v1304_v16 = vld [vmem:[%s1945_s8] ss:$0 sm:$0xff] }
 0x23c   :  { %v436_v7 = vmax.f32 %v434_v63, %v435_v3  ;;  %v545_v39 = vpack.c.bf16 %v1216_v40, %v1215_v36 }
 0x23e   :  { %v444_v11 = vpack.c.bf16 %v436_v7, %v436_v7  ;;  %1302 = vset.pattern.permute.xlu0 %v842_v46 }
 0x240   :  { %v453_v13 = vunpack.c.l.b16 %v444_v11 }
 0x241   :  { %v426_v61 = vld.sshfl [vmem:[#allocation1 + $0x20] sm:$0xff pattern:$0x73625140] }
 0x242   :  { %v437_v0 = vsel %vm429_vm14, %v426_v61, -inf }
 0x243   :  { %v438_v1 = vrot.slane %v437_v0, 4 }
 0x245   :  { %v439_v5 = vmax.f32 %v437_v0, %v438_v1 }
 0x247   :  { %v440_v6 = vrot.slane %v439_v5, 2 }
 0x249   :  { %v441_v8 = vmax.f32 %v439_v5, %v440_v6 }
 0x24b   :  { %v442_v9 = vrot.slane %v441_v8, 1 }
 0x24d   :  { %v443_v10 = vmax.f32 %v441_v8, %v442_v9 }
 0x24f   :  { %v445_v12 = vpack.c.bf16 %v443_v10, %v443_v10 }
 0x251   :  { %v454_v15 = vunpack.c.l.b16 %v445_v12 }
 0x253   :  { %v456_v17 = vsel %vm455_vm15, %v454_v15, %v453_v13 }
 0x254   :  { %v457_v18 = vpack.c.b16 %v456_v17, %v456_v17 }
 0x256   :  { %1203 = vmatmul.msk.bf16.vlgmr.msra.gmra.mxu2 %vm429_vm14, %v457_v18 }
 0x266   :  { %1229 = vmatmul.msk.bf16.vlgmr.msrb.gmra.mxu2 %vm129_vm3, %v544_v26 }
 0x276   :  { %1230 = vmatmul.msk.bf16.gmra.mxu2 %vm129_vm3, %v545_v39  ;;  %vm499_vm3 = vcmask 261120  }
 0x2a8   :  { %v830_v33 = vpop.permute.xlu0 %829 }
 0x2a9   :  { %vm831_vm7 = vcmp.lt.s32.totalorder %v1522_v14, %v830_v33 }
 0x2aa   :  { %v1724_v48 = vsel %vm831_vm7, 0.0, %v1367_v4 }
 0x2ab   :  { %v833_v31 = vperm.slane %v1724_v48, 0 }
 0x2ad   :  { %844 = vperm.xlu0 %1302, %v833_v31   ;;  %838 = vperm.xlu2 %1301, %v833_v31  }
 0x2d9   :  { %v473_v41 = vpop.f32.mrf.mxu2 }
 0x2da   :  { %v474_v49 = vadd.f32 %v1304_v16, %v473_v41  ;;  %v846_v41 = vperm.slane %v1724_v48, 1 }
 0x2dc   :  { %v477_v21 = vmax.f32 %v474_v49, 0.0 }
 0x2de   :  { %v478_v44 = vpack.c.bf16 %v477_v21, %v477_v21 }
 0x2e0   :  { %1212 = vmatmul.msk.bf16.vlgmr.msra.gmra.mxu3 %vm499_vm3, %v478_v44 }
 0x2e1   :  { %v475_v47 = vpop.f32.mrf.mxu2 }
 0x2e9   :  { %v592_v19 = vpop.f32.mrf.mxu2 }
 0x2f1   :  { %v594_v38 = vpop.f32.mrf.mxu2 }
 0x2f2   :  { %v602_v45 = vpack.c.bf16 %v594_v38, %v592_v19 }
 0x2f4   :  { %1235 = vmatmul.msk.bf16.vlgmr.msrb.gmra.mxu3 %vm168_vm5, %v602_v45 }
 0x2f9   :  { %v597_v2 = vpop.f32.mrf.mxu2 }
 0x301   :  { %v599_v27 = vpop.f32.mrf.mxu2 }
 0x302   :  { %v603_v35 = vpack.c.bf16 %v599_v27, %v597_v2 }
 0x304   :  { %1236 = vmatmul.msk.bf16.gmra.mxu3 %vm168_vm5, %v603_v35  ;;  %vm1067_vm5 = vcmask 255104  }
 0x307   :  { %v839_v46 = vpop.permute.xlu2 %838 }
 0x31f   :  { %v1834_v31 = vpop.permute.xlu0 %844 }
 0x363   :  { %v512_v50 = vpop.f32.mrf.mxu3 }
 0x364   :  { %v513_v51 = vadd.f32 %v1305_v34, %v512_v50  ;;  %v1839_v50 = vld [vmem:[%s1950_s13] ss:$0 sm:$0xff] }
 0x365   :  { %v1843_v37 = vrot.slane %v1839_v50, 2 }
 0x366   :  { %1062 = vst.msk [vmem:[#allocation2] sm:$0x3] %vm1061_vm8, %v513_v51 }
 0x36b   :  { %v514_v30 = vpop.f32.mrf.mxu3 }
 0x377   :  { %v1730_v52 = vpop.f32.mrf.mxu3 }
 0x378   :  { %v1733_v14 = vrot.slane %v1730_v52, 6  ;;  %v1736_v4 = vrot.slane %v1730_v52, 4  ;;  %v1739_v53 = vrot.slane %v1730_v52, 2  ;;  %v1237_v57 = vrot.slane %v1730_v52, 9 }
 0x37a   :  { %749 = vrot.lane.b32.xlu1 %v1733_v14, %s1365_s2  ;;  %747 = vrot.lane.b32.xlu0 %v1736_v4, %s1365_s2  ;;  %v661_v54 = vrot.slane %v1739_v53, 7  ;;  %v664_v61 = vrot.slane %v1736_v4, 7  ;;  %v667_v8 = vrot.slane %v1733_v14, 7 }
 0x37b   :  { %745 = vrot.lane.b32.xlu2 %v1739_v53, %s1365_s2 }
 0x37c   :  { %v663_v55 = vrot.slane %v661_v54, 2  ;;  %v662_v0 = vsel %vm1560_vm12, %v1237_v57, %v661_v54  ;;  %v666_v5 = vrot.slane %v664_v61, 2  ;;  %v669_v12 = vrot.slane %v667_v8, 2 }
 0x37e   :  { %v665_v3 = vsel %vm1560_vm12, %v663_v55, %v664_v61  ;;  %v668_v9 = vsel %vm1560_vm12, %v666_v5, %v667_v8  ;;  %v799_v61 = vrot.slane %v1839_v50, 6  ;;  %v870_v5 = vperm.slane %v839_v46, %v1655_v58 }
 0x37f   :  { %v1748_v56 = vpop.f32.mrf.mxu3 }
 0x380   :  { %v1753_v63 = vrot.slane %v1748_v56, 2  ;;  %v670_v1 = vrot.slane %v1748_v56, 7  ;;  %v645_v13 = vrot.slane %v1748_v56, 4  ;;  %v646_v59 = vrot.slane %v1748_v56, 6 }
 0x382   :  { %697 = vrot.lane.b32.xlu1 %v662_v0, %s1366_s6  ;;  %753 = vrot.lane.b32.xlu0 %v1753_v63, %s1365_s2  ;;  %v672_v6 = vrot.slane %v670_v1, 2  ;;  %v673_v7 = vrot.slane %v1753_v63, 7  ;;  %v671_v17 = vsel %vm1560_vm12, %v669_v12, %v670_v1  ;;  %v676_v20 = vrot.slane %v645_v13, 7 }
 0x383   :  { %699 = vrot.lane.b32.xlu2 %v665_v3, %s1366_s6  ;;  %v1238_v16 = vrot.slane %v646_v59, 9 }
 0x384   :  { %v674_v10 = vsel %vm1560_vm12, %v672_v6, %v673_v7  ;;  %v675_v18 = vrot.slane %v673_v7, 2 }
 0x386   :  { %v677_v25 = vsel %vm1560_vm12, %v675_v18, %v676_v20 }
 0x387   :  { %v1774_v11 = vpop.f32.mrf.mxu3 }
 0x388   :  { %v1778_v15 = vrot.slane %v1774_v11, 2  ;;  %v1787_v23 = vrot.slane %v1774_v11, 6  ;;  %v1801_v36 = vrot.slane %v1774_v11, 4  ;;  %v680_v39 = vrot.slane %v1774_v11, 7 }
 0x38a   :  { %701 = vrot.lane.b32.xlu1 %v668_v9, %s1366_s6  ;;  %705 = vrot.lane.b32.xlu0 %v674_v10, %s1366_s6  ;;  %v689_v26 = vrot.slane %v1787_v23, 7  ;;  %v682_v22 = vrot.slane %v680_v39, 2  ;;  %v683_v42 = vrot.slane %v1778_v15, 7  ;;  %v681_v43 = vsel %vm1560_vm12, %v1238_v16, %v680_v39 }
 0x38b   :  { %751 = vrot.lane.b32.xlu2 %v1748_v56, %s1365_s2  ;;  %v686_v21 = vrot.slane %v1801_v36, 7  ;;  %v798_v39 = vrot.slane %v1839_v50, 4 }
 0x38c   :  { %v691_v29 = vrot.slane %v689_v26, 2  ;;  %v684_v49 = vsel %vm1560_vm12, %v682_v22, %v683_v42  ;;  %v685_v44 = vrot.slane %v683_v42, 2 }
 0x38d   :  { %v688_v47 = vrot.slane %v686_v21, 2 }
 0x38e   :  { %v687_v38 = vsel %vm1560_vm12, %v685_v44, %v686_v21  ;;  %v874_v21 = vperm.slane %v839_v46, %v1657_v60  ;;  %v882_v44 = vperm.slane %v1834_v31, %v1653_v32 }
 0x38f   :  { %v1789_v24 = vpop.f32.mrf.mxu3  ;;  %v690_v45 = vsel %vm1560_vm12, %v688_v47, %v689_v26 }
 0x390   :  { %v692_v28 = vrot.slane %v1789_v24, 7  ;;  %v650_v19 = vrot.slane %v1789_v24, 2 }
 0x392   :  { %755 = vrot.lane.b32.xlu1 %v645_v13, %s1365_s2  ;;  %759 = vrot.lane.b32.xlu0 %v1778_v15, %s1365_s2  ;;  %v693_v40 = vsel %vm1560_vm12, %v691_v29, %v692_v28  ;;  %v694_v2 = vrot.slane %v692_v28, 2  ;;  %v695_v27 = vrot.slane %v650_v19, 7 }
 0x393   :  { %703 = vrot.lane.b32.xlu2 %v671_v17, %s1366_s6 }
 0x394   :  { %v696_v35 = vsel %vm1560_vm12, %v694_v2, %v695_v27 }
 0x39a   :  { %707 = vrot.lane.b32.xlu1 %v677_v25, %s1366_s6  ;;  %765 = vrot.lane.b32.xlu0 %v1789_v24, %s1365_s2  ;;  %v866_v25 = vperm.slane %v839_v46, %v1653_v32 }
 0x39b   :  { %757 = vrot.lane.b32.xlu2 %v1774_v11, %s1365_s2 }
 0x3a2   :  { %761 = vrot.lane.b32.xlu1 %v1801_v36, %s1365_s2  ;;  %717 = vrot.lane.b32.xlu0 %v693_v40, %s1366_s6 }
 0x3a3   :  { %763 = vrot.lane.b32.xlu2 %v1787_v23, %s1365_s2 }
 0x3aa   :  { %709 = vrot.lane.b32.xlu1 %v681_v43, %s1366_s6  ;;  %857 = vperm.xlu0 %1302, %v846_v41  }
 0x3ab   :  { %711 = vrot.lane.b32.xlu2 %v684_v49, %s1366_s6 }
 0x3b2   :  { %713 = vrot.lane.b32.xlu1 %v687_v38, %s1366_s6 }
 0x3b3   :  { %715 = vrot.lane.b32.xlu2 %v690_v45, %s1366_s6 }
 0x3ba   :  { %719 = vrot.lane.b32.xlu1 %v696_v35, %s1366_s6 }
 0x3bb   :  { %851 = vperm.xlu2 %1301, %v846_v41  }
 0x3c2   :  { %767 = vrot.lane.b32.xlu1 %v650_v19, %s1365_s2 }
 0x3d5   :  { %v746_v33 = vpop.permute.xlu2 %745 }
 0x3dd   :  { %v700_v48 = vpop.permute.xlu2 %699 }
 0x3de   :  { %v734_v51 = vadd.f32 %v700_v48, %v1739_v53  ;;  %v878_v53 = vperm.slane %v839_v46, %v1659_v62 }
 0x3e5   :  { %v752_v34 = vpop.permute.xlu2 %751 }
 0x3ec   :  { %v750_v30 = vpop.permute.xlu1 %749  ;;  %v748_v54 = vpop.permute.xlu0 %747 }
 0x3ed   :  { %v782_v55 = vadd.f32 %v748_v54, %v734_v51  ;;  %v704_v57 = vpop.permute.xlu2 %703 }
 0x3ee   :  { %v736_v0 = vadd.f32 %v704_v57, %v1733_v14 }
 0x3ef   :  { %v804_v1 = vadd.f32 %v1843_v37, %v782_v55 }
 0x3f0   :  { %v784_v3 = vadd.f32 %v752_v34, %v736_v0 }
 0x3f1   :  { %v816_v6 = vmax.f32 %v804_v1, 0.0 }
 0x3f2   :  { %v806_v7 = vadd.f32 %v799_v61, %v784_v3  ;;  %v886_v3 = vperm.slane %v1834_v31, %v1655_v58 }
 0x3f3   :  { %v924_v8 = vadd.f32 %v870_v5, %v816_v6 }
 0x3f4   :  { %v818_v9 = vmax.f32 %v806_v7, 0.0  ;;  %v698_v10 = vpop.permute.xlu1 %697  ;;  %v754_v12 = vpop.permute.xlu0 %753 }
 0x3f5   :  { %949 = vst [vmem:[#allocation1 + $0x1] ss:$4 sm:$0xff] %v924_v8  ;;  %v733_v13 = vadd.f32 %v698_v10, %v1730_v52  ;;  %v1851_v17 = vpop.permute.xlu2 %757 }
 0x3f6   :  { %v926_v18 = vadd.f32 %v878_v53, %v818_v9 }
 0x3f7   :  { %v781_v14 = vadd.f32 %v746_v33, %v733_v13 }
 0x3f8   :  { %953 = vst [vmem:[#allocation1 + $0x3] ss:$4 sm:$0xff] %v926_v18 }
 0x3f9   :  { %v803_v20 = vadd.f32 %v1839_v50, %v781_v14 }
 0x3fb   :  { %v815_v26 = vmax.f32 %v803_v20, 0.0 }
 0x3fc   :  { %v702_v28 = vpop.permute.xlu1 %701  ;;  %v706_v29 = vpop.permute.xlu0 %705 }
 0x3fd   :  { %v923_v40 = vadd.f32 %v866_v25, %v815_v26  ;;  %v735_v22 = vadd.f32 %v702_v28, %v1736_v4  ;;  %v737_v42 = vadd.f32 %v706_v29, %v1748_v56  ;;  %v764_v52 = vpop.permute.xlu2 %763 }
 0x3ff   :  { %947 = vst [vmem:[#allocation1] ss:$4 sm:$0xff] %v923_v40  ;;  %v783_v16 = vadd.f32 %v750_v30, %v735_v22  ;;  %v785_v41 = vadd.f32 %v754_v12, %v737_v42 }
 0x401   :  { %v805_v43 = vadd.f32 %v798_v39, %v783_v16  ;;  %v807_v49 = vadd.f32 %v1839_v50, %v785_v41 }
 0x403   :  { %v817_v47 = vmax.f32 %v805_v43, 0.0  ;;  %v819_v19 = vmax.f32 %v807_v49, 0.0 }
 0x404   :  { %v756_v38 = vpop.permute.xlu1 %755  ;;  %v760_v4 = vpop.permute.xlu0 %759 }
 0x405   :  { %v925_v45 = vadd.f32 %v874_v21, %v817_v47  ;;  %v927_v2 = vadd.f32 %v882_v44, %v819_v19  ;;  %v712_v27 = vpop.permute.xlu2 %711 }
 0x406   :  { %v740_v35 = vadd.f32 %v712_v27, %v1774_v11 }
 0x407   :  { %951 = vst [vmem:[#allocation1 + $0x2] ss:$4 sm:$0xff] %v925_v45 }
 0x408   :  { %955 = vst [vmem:[#allocation1 + $0x20] ss:$4 sm:$0xff] %v927_v2  ;;  %v788_v46 = vadd.f32 %v760_v4, %v740_v35  ;;  %v1278_v35 = vld [vmem:[%s1953_s16 + $0x8] sm:$0xff] }
 0x409   :  { %1054 = vmatpush.bf16.msrb.mxu0 %v1278_v35 }
 0x40a   :  { %v810_v0 = vadd.f32 %v1843_v37, %v788_v46 }
 0x40c   :  { %v708_v33 = vpop.permute.xlu1 %707  ;;  %v766_v48 = vpop.permute.xlu0 %765  ;;  %v822_v53 = vmax.f32 %v810_v0, 0.0 }
 0x40d   :  { %v738_v34 = vadd.f32 %v708_v33, %v1753_v63  ;;  %v716_v51 = vpop.permute.xlu2 %715 }
 0x40e   :  { %v742_v30 = vadd.f32 %v716_v51, %v1801_v36  ;;  %v958_v31 = vld.sshfl [vmem:[#allocation1] sm:$0xff pattern:$0x73625140] }
 0x40f   :  { %v786_v54 = vadd.f32 %v756_v38, %v738_v34  ;;  %v972_v4 = vsel %vm429_vm14, %v958_v31, -inf  ;;  %v1280_v31 = vld [vmem:[%s1955_s18 + $0x8] sm:$0xff] }
 0x410   :  { %v790_v55 = vadd.f32 %v764_v52, %v742_v30 }
 0x411   :  { %v808_v57 = vadd.f32 %v1843_v37, %v786_v54 }
 0x412   :  { %v812_v1 = vadd.f32 %v799_v61, %v790_v55 }
 0x413   :  { %v820_v5 = vmax.f32 %v808_v57, 0.0 }
 0x414   :  { %v762_v11 = vpop.permute.xlu1 %761  ;;  %v718_v6 = vpop.permute.xlu0 %717  ;;  %v824_v9 = vmax.f32 %v812_v1, 0.0 }
 0x415   :  { %v928_v7 = vadd.f32 %v886_v3, %v820_v5  ;;  %v743_v63 = vadd.f32 %v718_v6, %v1787_v23  ;;  %v852_v8 = vpop.permute.xlu2 %851 }
 0x416   :  { %v894_v36 = vperm.slane %v852_v8, %v1655_v58  ;;  %v902_v10 = vperm.slane %v852_v8, %v1659_v62  ;;  %v993_v62 = vld [vmem:[%s1951_s14] sm:$0xf]  ;;  %v890_v56 = vperm.slane %v852_v8, %v1653_v32 }
 0x417   :  { %957 = vst [vmem:[#allocation1 + $0x21] ss:$4 sm:$0xff] %v928_v7  ;;  %v791_v12 = vadd.f32 %v766_v48, %v743_v63  ;;  %v1008_v28 = vsel %vm136_vm0, %v993_v62, 0  ;;  %vm973_vm0 = vcmask 60416   ;;  %v1282_v62 = vld [vmem:[%s1957_s20 + $0x8] sm:$0xff] }
 0x418   :  { %v930_v13 = vadd.f32 %v894_v36, %v822_v53  ;;  %v932_v61 = vadd.f32 %v902_v10, %v824_v9  ;;  %1017 = vmatpush.bf16.msrb.mxu1 %v1008_v28  ;;  %v1307_v36 = vld [vmem:[%s1952_s15] ss:$0 sm:$0xff]  ;;  %1137 = vmatpush.bf16.msra.mxu2 %v1282_v62 }
 0x419   :  { %v813_v18 = vadd.f32 %v1839_v50, %v791_v12  ;;  %v1281_v28 = vld [vmem:[%s1957_s20] sm:$0xff]  ;;  %s1151_s20 = sshll.u32 %s1373_s4, 4  ;;  %s1152_s20 = int_to_ptr.vmem [resolvable:$true] %s1151_s20 }
 0x41a   :  { %961 = vst [vmem:[#allocation1 + $0x1] ss:$4 sm:$0xff] %v930_v13 }
 0x41b   :  { %963 = vst [vmem:[#allocation1 + $0x3] ss:$4 sm:$0xff] %v932_v61  ;;  %v825_v25 = vmax.f32 %v813_v18, 0.0 }
 0x41c   :  { %v710_v14 = vpop.permute.xlu1 %709  ;;  %v858_v20 = vpop.permute.xlu0 %857  ;;  %1100 = vmatpush.bf16.msra.mxu1 %v1280_v31  ;;  %1138 = vmatpush.bf16.msra.mxu2 %v1281_v28 }
 0x41d   :  { %v739_v23 = vadd.f32 %v710_v14, %v646_v59  ;;  %v906_v26 = vperm.slane %v858_v20, %v1653_v32  ;;  %v1308_v14 = vld [vmem:[%s1954_s17] ss:$0 sm:$0xff] }
 0x41e   :  { %v959_v22 = vld.sshfl [vmem:[#allocation1 + $0x20] sm:$0xff pattern:$0x73625140] }
 0x41f   :  { %v787_v29 = vadd.f32 %v1851_v17, %v739_v23  ;;  %v933_v40 = vadd.f32 %v906_v26, %v825_v25  ;;  %v898_v17 = vperm.slane %v852_v8, %v1657_v60  ;;  %v974_v19 = vsel %vm973_vm0, %v959_v22, -inf  ;;  %v1279_v26 = vld [vmem:[%s1955_s18] sm:$0xff] }
 0x420   :  { %v975_v45 = vmax.f32 %v972_v4, %v974_v19  ;;  %1101 = vmatpush.bf16.msra.mxu1 %v1279_v26 }
 0x421   :  { %v809_v42 = vadd.f32 %v1839_v50, %v787_v29  ;;  %964 = vst [vmem:[#allocation1 + $0x20] ss:$4 sm:$0xff] %v933_v40  ;;  %v910_v50 = vperm.slane %v858_v20, %v1655_v58 }
 0x422   :  { %v976_v60 = vrot.slane %v975_v45, 4 }
 0x423   :  { %v821_v59 = vmax.f32 %v809_v42, 0.0  ;;  %v1309_v42 = vld [vmem:[%s1956_s19] ss:$0 sm:$0xff]  ;;  %s1374_s19 = smov [#allocation4]  }
 0x424   :  { %v714_v52 = vpop.permute.xlu1 %713  ;;  %v977_v33 = vmax.f32 %v975_v45, %v976_v60  ;;  %s1162_s2 = sshll.u32 %s1374_s19, 4  ;;  %s1163_s2 = int_to_ptr.vmem [resolvable:$true] %s1162_s2 }
 0x425   :  { %v929_v16 = vadd.f32 %v890_v56, %v821_v59  ;;  %v741_v41 = vadd.f32 %v714_v52, %v1778_v15 }
 0x426   :  { %v978_v34 = vrot.slane %v977_v33, 2 }
 0x427   :  { %960 = vst [vmem:[#allocation1] ss:$4 sm:$0xff] %v929_v16  ;;  %v789_v43 = vadd.f32 %v762_v11, %v741_v41  ;;  %v1310_v41 = vld [vmem:[%s1958_s21] ss:$0 sm:$0xff] }
 0x428   :  { %v979_v46 = vmax.f32 %v977_v33, %v978_v34 }
 0x429   :  { %v811_v49 = vadd.f32 %v798_v39, %v789_v43 }
 0x42a   :  { %v980_v55 = vrot.slane %v979_v46, 1 }
 0x42b   :  { %v823_v21 = vmax.f32 %v811_v49, 0.0 }
 0x42c   :  { %v720_v44 = vpop.permute.xlu1 %719  ;;  %v981_v1 = vmax.f32 %v979_v46, %v980_v55 }
 0x42d   :  { %v931_v47 = vadd.f32 %v898_v17, %v823_v21  ;;  %v744_v32 = vadd.f32 %v720_v44, %v1789_v24  ;;  %v1277_v24 = vld [vmem:[%s1953_s16] sm:$0xff] }
 0x42e   :  { %1055 = vmatpush.bf16.msrb.mxu0 %v1277_v24  ;;  %v991_v6 = vpack.c.bf16 %v981_v1, %v981_v1 }
 0x42f   :  { %962 = vst [vmem:[#allocation1 + $0x2] ss:$4 sm:$0xff] %v931_v47 }
 0x430   :  { %v1000_v63 = vunpack.c.l.b16 %v991_v6 }
 0x434   :  { %v768_v38 = vpop.permute.xlu1 %767 }
 0x435   :  { %v792_v15 = vadd.f32 %v768_v38, %v744_v32 }
 0x436   :  { %v966_v48 = vld.sshfl [vmem:[#allocation1] sm:$0xff pattern:$0x73625140] }
 0x437   :  { %v814_v2 = vadd.f32 %v1843_v37, %v792_v15  ;;  %v982_v58 = vsel %vm429_vm14, %v966_v48, -inf }
 0x439   :  { %v826_v39 = vmax.f32 %v814_v2, 0.0 }
 0x43b   :  { %v934_v27 = vadd.f32 %v910_v50, %v826_v39 }
 0x43d   :  { %965 = vst [vmem:[#allocation1 + $0x21] ss:$4 sm:$0xff] %v934_v27 }
 0x444   :  { %v967_v37 = vld.sshfl [vmem:[#allocation1 + $0x20] sm:$0xff pattern:$0x73625140] }
 0x445   :  { %v983_v51 = vsel %vm973_vm0, %v967_v37, -inf }
 0x446   :  { %v984_v30 = vmax.f32 %v982_v58, %v983_v51 }
 0x448   :  { %v985_v54 = vrot.slane %v984_v30, 4 }
 0x44a   :  { %v986_v57 = vmax.f32 %v984_v30, %v985_v54 }
 0x44c   :  { %v987_v0 = vrot.slane %v986_v57, 2 }
 0x44e   :  { %v988_v3 = vmax.f32 %v986_v57, %v987_v0 }
 0x450   :  { %v989_v5 = vrot.slane %v988_v3, 1 }
 0x452   :  { %v990_v11 = vmax.f32 %v988_v3, %v989_v5 }
 0x454   :  { %v992_v7 = vpack.c.bf16 %v990_v11, %v990_v11 }
 0x456   :  { %v1001_v8 = vunpack.c.l.b16 %v992_v7 }
 0x458   :  { %v1002_v53 = vsel %vm455_vm15, %v1001_v8, %v1000_v63 }
 0x459   :  { %v1003_v9 = vpack.c.b16 %v1002_v53, %v1002_v53 }
 0x45b   :  { %1239 = vmatmul.msk.bf16.vlgmr.msrb.gmra.mxu1 %vm429_vm14, %v1003_v9 }
 0x4d8   :  { %v1019_v10 = vpop.f32.mrf.mxu1 }
 0x4d9   :  { %v1020_v12 = vadd.f32 %v1307_v36, %v1019_v10 }
 0x4db   :  { %v1023_v13 = vmax.f32 %v1020_v12, 0.0 }
 0x4dd   :  { %v1024_v61 = vpack.c.bf16 %v1023_v13, %v1023_v13 }
 0x4df   :  { %1248 = vmatmul.msk.bf16.vlgmr.msrb.gmra.mxu0 %vm499_vm3, %v1024_v61 }
 0x4e0   :  { %v1021_v18 = vpop.f32.mrf.mxu1 }
 0x55c   :  { %v1057_v20 = vpop.f32.mrf.mxu0 }
 0x55d   :  { %v1058_v23 = vadd.f32 %v1308_v14, %v1057_v20 }
 0x55f   :  { %1064 = vrot.lane.b32.xlu1 %v1058_v23, %s1372_s27 }
 0x564   :  { %v1059_v25 = vpop.f32.mrf.mxu0 }
 0x5d1   :  { %v1065_v29 = vpop.permute.xlu1 %1064 }
 0x5d2   :  { %1068 = vst.msk [vmem:[#allocation2] sm:$0x3] %vm1067_vm5, %v1065_v29 }
 0x5d3   :  { %1156 = dma.vmem_to_hbm [thread:$0]  %s1152_s20, 32, %s1154_s10, [#allocation3]  }
 0x5d9   :  { %v1069_v40 = vld [vmem:[#allocation2] sm:$0x3] }
 0x5da   :  { %v1070_v22 = vpack.c.bf16 %v1069_v40, %v1069_v40 }
 0x5dc   :  { %1257 = vmatmul.msk.bf16.vlgmr.msra.gmra.mxu1 %vm499_vm3, %v1070_v22 }
 0x659   :  { %v1103_v56 = vpop.f32.mrf.mxu1 }
 0x65a   :  { %v1104_v59 = vadd.f32 %v1309_v42, %v1103_v56 }
 0x65c   :  { %v1107_v52 = vpack.c.bf16 %v1104_v59, %v1104_v59 }
 0x65e   :  { %1266 = vmatmul.msk.bf16.vlgmr.msra.gmra.mxu2 %vm499_vm3, %v1107_v52 }
 0x661   :  { %v1105_v16 = vpop.f32.mrf.mxu1 }
 0x6e1   :  { %v1140_v43 = vpop.f32.mrf.mxu2 }
 0x6e2   :  { %v1141_v49 = vadd.f32 %v1310_v41, %v1140_v43 }
 0x6e4   :  { %1145 = vst.msk [vmem:[#allocation4] sm:$0x3] %vm1144_vm9, %v1141_v49 }
 0x6e5   :  { %1167 = dma.vmem_to_hbm [thread:$0]  %s1163_s2, 32, %s1165_s30, [#allocation5]  }
 0x6e9   :  { %v1142_v17 = vpop.f32.mrf.mxu2 }
 0x6ea   :  { %1359 = dma.done.wait [#allocation3], 32  }
 0x6eb   :  { %1360 = vsyncadd [#allocation3], 4294967264 }
 0x6ec   :  { %1361 = dma.done.wait [#allocation5], 32  }
 0x6ed   :  { %1362 = vsyncadd [#allocation5], 4294967264 }
 0x6ee   :  { %1176 = vsyncpa [#allocation3], 1 }
 0x6ef   :  { %1177 = vsyncpa [#allocation5], 1 }

</bundles_post_ra>
